<compile_context>
chip_gen: v7x
topology: tpu7x:2x2x1
jax: 0.10.0
libtpu: 0.0.40
codegen_flags: <defaults>
</compile_context>

<pallas_src>
import functools

import jax
import jax.numpy as jnp
from jax.experimental import pallas as pl
from jax.experimental.pallas import tpu as pltpu


LN_EPS = 1e-5          # PyTorch nn.LayerNorm default eps
LEAKY_SLOPE = 0.2      # LeakyReLU(0.2)


def _round_up(x, m):
    return ((x + m - 1) // m) * m


def _layernorm_fused(h, gamma, beta, true_dim):
    """Single-pass LayerNorm over the (possibly padded) last dim.

    Padded columns of `h` are exactly zero (zero weight columns / zero bias),
    so summing over the padded width and dividing by the *true* feature count
    reproduces the unpadded statistics.  `gamma` is zero in the padded region,
    which drives padded columns back to exactly 0 after the affine.
    """
    inv_n = 1.0 / float(true_dim)
    s = jnp.sum(h, axis=-1, keepdims=True)
    s2 = jnp.sum(h * h, axis=-1, keepdims=True)
    mean = s * inv_n
    var = s2 * inv_n - mean * mean          # biased variance (PyTorch LN)
    inv = jax.lax.rsqrt(var + LN_EPS)       # EUP
    return (h - mean) * inv * gamma + beta


def _leaky_relu(x):
    return jnp.where(x > 0, x, LEAKY_SLOPE * x)


def clip_w_mapper_kernel(
    x_ref,                       # (TB, Cp)  bf16   -- streamed batch tile
    w1_ref, b1_ref,              # (Cp, Hp) bf16, (1, Hp) f32
    g1_ref, be1_ref,             # (1, Hp) f32, (1, Hp) f32      LayerNorm 1
    w2_ref, b2_ref,              # (Hp, Hp) bf16, (1, Hp) f32
    g2_ref, be2_ref,             # (1, Hp) f32, (1, Hp) f32      LayerNorm 2
    w3_ref, b3_ref,              # (Hp, Op) bf16, (1, Op) f32
    o_ref,                       # (TB, Op) f32
    *, hidden_dim,
):
    x = x_ref[...]                                       # bf16, MXU-native

    # --- Linear 1 (bf16 MXU, f32 acc) + LayerNorm + LeakyReLU (f32 VPU) ----
    h = jnp.dot(x, w1_ref[...], preferred_element_type=jnp.float32)
    h = h + b1_ref[...]
    h = _leaky_relu(_layernorm_fused(h, g1_ref[...], be1_ref[...], hidden_dim))

    # --- Linear 2 + LayerNorm + LeakyReLU ----------------------------------
    h = jnp.dot(h.astype(jnp.bfloat16), w2_ref[...],
                preferred_element_type=jnp.float32)
    h = h + b2_ref[...]
    h = _leaky_relu(_layernorm_fused(h, g2_ref[...], be2_ref[...], hidden_dim))

    # --- Linear 3 (output projection) --------------------------------------
    out = jnp.dot(h.astype(jnp.bfloat16), w3_ref[...],
                  preferred_element_type=jnp.float32)
    out = out + b3_ref[...]
    o_ref[...] = out.astype(o_ref.dtype)


def clip_w_mapper(clip_embedding, params, *, k, w_dim, batch_tile=256):
    """Forward pass of CLIPWMapper. clip_embedding: (B, clip_dim) float32."""
    B, clip_dim = clip_embedding.shape
    H = params["w1"].shape[1]
    out_dim = k * w_dim

    # Padded / tiled geometry (lane = 128, sublane = 8).
    Cp = _round_up(clip_dim, 128)
    Hp = _round_up(H, 128)
    Op = _round_up(out_dim, 128)
    TB = min(batch_tile, _round_up(B, 8))
    Bp = _round_up(B, TB)

    def pad2(a, rows, cols, dtype):
        a = a.astype(dtype)
        return jnp.pad(a, ((0, rows - a.shape[0]), (0, cols - a.shape[1])))

    # Matmul operands in bf16; biases / LN affine stay f32 (added post-acc).
    x_p = pad2(clip_embedding, Bp, Cp, jnp.bfloat16)
    w1 = pad2(params["w1"], Cp, Hp, jnp.bfloat16)
    w2 = pad2(params["w2"], Hp, Hp, jnp.bfloat16)
    w3 = pad2(params["w3"], Hp, Op, jnp.bfloat16)
    b1 = pad2(params["b1"], 1, Hp, jnp.float32)
    b2 = pad2(params["b2"], 1, Hp, jnp.float32)
    b3 = pad2(params["b3"], 1, Op, jnp.float32)
    g1 = pad2(params["ln1_g"], 1, Hp, jnp.float32)
    be1 = pad2(params["ln1_b"], 1, Hp, jnp.float32)
    g2 = pad2(params["ln2_g"], 1, Hp, jnp.float32)
    be2 = pad2(params["ln2_b"], 1, Hp, jnp.float32)

    grid = (Bp // TB,)

    def resident(shape):
        # Same block every grid step -> stays VMEM-resident (loaded once).
        return pl.BlockSpec(shape, lambda i: (0, 0))

    in_specs = [
        pl.BlockSpec((TB, Cp), lambda i: (i, 0)),            # streamed x tile
        resident((Cp, Hp)), resident((1, Hp)),                # w1, b1
        resident((1, Hp)), resident((1, Hp)),                 # ln1 gamma/beta
        resident((Hp, Hp)), resident((1, Hp)),                # w2, b2
        resident((1, Hp)), resident((1, Hp)),                 # ln2 gamma/beta
        resident((Hp, Op)), resident((1, Op)),                # w3, b3
    ]
    out_specs = pl.BlockSpec((TB, Op), lambda i: (i, 0))      # lane-dense out

    # Advisory cost estimate for the XLA scheduler.
    flops = 2 * Bp * (Cp * Hp + Hp * Hp + Hp * Op)
    bytes_accessed = (
        x_p.size * 2
        + (w1.size + w2.size + w3.size) * 2
        + (b1.size + b2.size + b3.size
           + g1.size + g2.size + be1.size + be2.size) * 4
        + Bp * Op * 4
    )

    # VMEM budget: (possibly double-buffered) bf16 weights + streamed x/out
    # tiles + f32 intermediates, with headroom; clamped to the smallest
    # physical VMEM across generations (v7x: 64 MiB).
    weight_bytes = (w1.size + w2.size + w3.size) * 2
    tile_bytes = 2 * (TB * Cp * 2 + TB * Op * 4) + 4 * TB * Hp * 4
    vmem_limit = int(min(2 * weight_bytes + tile_bytes + (8 << 20), 64 << 20))
    # TODO(synk): for very large k*w_dim (>~8k) on v7x, tile w3 over output
    # columns instead of keeping it fully resident.

    flat = pl.pallas_call(
        functools.partial(clip_w_mapper_kernel, hidden_dim=H),
        out_shape=jax.ShapeDtypeStruct((Bp, Op), jnp.float32),
        grid_spec=pltpu.PrefetchScalarGridSpec(
            num_scalar_prefetch=0,
            grid=grid,
            in_specs=in_specs,
            out_specs=out_specs,
        ),
        compiler_params=pltpu.CompilerParams(
            dimension_semantics=("parallel",),
            vmem_limit_bytes=vmem_limit,
        ),
        cost_estimate=pl.CostEstimate(
            flops=flops, transcendentals=2 * Bp, bytes_accessed=bytes_accessed),
    )(x_p, w1, b1, g1, be1, w2, b2, g2, be2, w3, b3)

    # Glue: drop padding, reshape (B, k*w_dim) -> (B, k, w_dim).
    return flat[:B, :out_dim].reshape(B, k, w_dim)


def init_params(key, clip_dim, w_dim, k, hidden_dim):
    """Deterministic synthetic parameters (shapes match nn.Linear/LayerNorm)."""
    ks = jax.random.split(key, 6)
    out_dim = w_dim * k

    def lin(kw, kb, fan_in, fan_out):
        bound = 1.0 / jnp.sqrt(fan_in)
        w = jax.random.uniform(kw, (fan_in, fan_out), jnp.float32, -bound, bound)
        b = jax.random.uniform(kb, (1, fan_out), jnp.float32, -bound, bound)
        return w, b

    w1, b1 = lin(ks[0], ks[1], clip_dim, hidden_dim)
    w2, b2 = lin(ks[2], ks[3], hidden_dim, hidden_dim)
    w3, b3 = lin(ks[4], ks[5], hidden_dim, out_dim)

    return {
        "w1": w1, "b1": b1,
        "ln1_g": jnp.ones((1, hidden_dim), jnp.float32),
        "ln1_b": jnp.zeros((1, hidden_dim), jnp.float32),
        "w2": w2, "b2": b2,
        "ln2_g": jnp.ones((1, hidden_dim), jnp.float32),
        "ln2_b": jnp.zeros((1, hidden_dim), jnp.float32),
        "w3": w3, "b3": b3,
    }


def _reference(x, p, *, k, w_dim):
    """Plain-JAX f32 reference of the same forward pass."""
    def ln(h, g, b):
        mean = jnp.mean(h, axis=-1, keepdims=True)
        xc = h - mean
        var = jnp.mean(xc * xc, axis=-1, keepdims=True)
        return xc * jax.lax.rsqrt(var + LN_EPS) * g + b

    def lrelu(h):
        return jnp.where(h > 0, h, LEAKY_SLOPE * h)

    h = x @ p["w1"] + p["b1"]
    h = lrelu(ln(h, p["ln1_g"], p["ln1_b"]))
    h = h @ p["w2"] + p["b2"]
    h = lrelu(ln(h, p["ln2_g"], p["ln2_b"]))
    out = h @ p["w3"] + p["b3"]
    return out.reshape(x.shape[0], k, w_dim)


if __name__ == "__main__":
    # Small, deliberately non-128-aligned shapes to exercise the padding path
    # (batch=5, clip_dim=96 -> w_offset: (5, k=2, w_dim=80), hidden=160).
    batch, clip_dim, w_dim, k, hidden_dim = 5, 96, 80, 2, 160

    key = jax.random.PRNGKey(0)
    k_x, k_p = jax.random.split(key)
    clip_embedding = jax.random.normal(k_x, (batch, clip_dim), jnp.float32)
    params = init_params(k_p, clip_dim, w_dim, k, hidden_dim)

    w_offset = clip_w_mapper(clip_embedding, params, k=k, w_dim=w_dim)
    w_offset = jax.block_until_ready(w_offset)

    assert w_offset.shape == (batch, k, w_dim)
    assert bool(jnp.all(jnp.isfinite(w_offset)))

    # bf16 matmul operands (f32 accumulation) -> expect ~1e-2-level agreement
    # with the pure-f32 reference.
    ref = _reference(clip_embedding, params, k=k, w_dim=w_dim)
    assert jnp.allclose(w_offset, ref, atol=5e-2, rtol=5e-2), (
        float(jnp.max(jnp.abs(w_offset - ref))))

    print("KERNEL_OK")
</pallas_src>

<mosaic_0001>
module attributes {stable_mosaic.version = 11 : i64} {
  func.func @clip_w_mapper_kernel(%arg0: i32, %arg1: memref<8x128xbf16, #tpu.memory_space<vmem>>, %arg2: memref<128x256xbf16, #tpu.memory_space<vmem>>, %arg3: memref<1x256xf32, #tpu.memory_space<vmem>>, %arg4: memref<1x256xf32, #tpu.memory_space<vmem>>, %arg5: memref<1x256xf32, #tpu.memory_space<vmem>>, %arg6: memref<256x256xbf16, #tpu.memory_space<vmem>>, %arg7: memref<1x256xf32, #tpu.memory_space<vmem>>, %arg8: memref<1x256xf32, #tpu.memory_space<vmem>>, %arg9: memref<1x256xf32, #tpu.memory_space<vmem>>, %arg10: memref<256x256xbf16, #tpu.memory_space<vmem>>, %arg11: memref<1x256xf32, #tpu.memory_space<vmem>>, %arg12: memref<8x256xf32, #tpu.memory_space<vmem>>) attributes {dimension_semantics = [#tpu.dimension_semantics<parallel>], iteration_bounds = array<i64: 1>, scalar_prefetch = 0 : i64, scratch_operands = 0 : i64, tpu.core_type = #tpu.core_type<tc>, window_params = [{transform_indices = @transform_0, window_bounds = array<i64: 8, 128>}, {pipeline_mode = #tpu.pipeline_mode<synchronous>, transform_indices = @transform_1, window_bounds = array<i64: 128, 256>}, {pipeline_mode = #tpu.pipeline_mode<synchronous>, transform_indices = @transform_2, window_bounds = array<i64: 1, 256>}, {pipeline_mode = #tpu.pipeline_mode<synchronous>, transform_indices = @transform_3, window_bounds = array<i64: 1, 256>}, {pipeline_mode = #tpu.pipeline_mode<synchronous>, transform_indices = @transform_4, window_bounds = array<i64: 1, 256>}, {pipeline_mode = #tpu.pipeline_mode<synchronous>, transform_indices = @transform_5, window_bounds = array<i64: 256, 256>}, {pipeline_mode = #tpu.pipeline_mode<synchronous>, transform_indices = @transform_6, window_bounds = array<i64: 1, 256>}, {pipeline_mode = #tpu.pipeline_mode<synchronous>, transform_indices = @transform_7, window_bounds = array<i64: 1, 256>}, {pipeline_mode = #tpu.pipeline_mode<synchronous>, transform_indices = @transform_8, window_bounds = array<i64: 1, 256>}, {pipeline_mode = #tpu.pipeline_mode<synchronous>, transform_indices = @transform_9, window_bounds = array<i64: 256, 256>}, {pipeline_mode = #tpu.pipeline_mode<synchronous>, transform_indices = @transform_10, window_bounds = array<i64: 1, 256>}, {transform_indices = @transform_11, window_bounds = array<i64: 8, 256>}]} {
    %c0 = arith.constant 0 : index
    %c0_0 = arith.constant 0 : index
    %0 = vector.load %arg1[%c0, %c0_0] : memref<8x128xbf16, #tpu.memory_space<vmem>>, vector<8x128xbf16>
    %c0_1 = arith.constant 0 : index
    %c0_2 = arith.constant 0 : index
    %1 = vector.load %arg2[%c0_1, %c0_2] : memref<128x256xbf16, #tpu.memory_space<vmem>>, vector<128x256xbf16>
    %cst = arith.constant dense<0.000000e+00> : vector<8x256xf32>
    %2 = tpu.matmul %0, %1, %cst {dimension_numbers = #tpu.dot_dimension_numbers<[1], [0], [0], [1], [0, 0, 1, 1], [], []>} : vector<8x128xbf16>, vector<128x256xbf16>, vector<8x256xf32> -> vector<8x256xf32>
    %c0_3 = arith.constant 0 : index
    %c0_4 = arith.constant 0 : index
    %3 = vector.load %arg3[%c0_3, %c0_4] : memref<1x256xf32, #tpu.memory_space<vmem>>, vector<1x256xf32>
    %4 = vector.broadcast %3 : vector<1x256xf32> to vector<8x256xf32>
    %5 = arith.addf %2, %4 : vector<8x256xf32>
    %c0_5 = arith.constant 0 : index
    %c0_6 = arith.constant 0 : index
    %6 = vector.load %arg4[%c0_5, %c0_6] : memref<1x256xf32, #tpu.memory_space<vmem>>, vector<1x256xf32>
    %c0_7 = arith.constant 0 : index
    %c0_8 = arith.constant 0 : index
    %7 = vector.load %arg5[%c0_7, %c0_8] : memref<1x256xf32, #tpu.memory_space<vmem>>, vector<1x256xf32>
    %cst_9 = arith.constant dense<0.000000e+00> : vector<8xf32>
    %8 = vector.multi_reduction <add>, %5, %cst_9 [1] : vector<8x256xf32> to vector<8xf32>
    %9 = vector.shape_cast %8 : vector<8xf32> to vector<8x1xf32>
    %10 = arith.mulf %5, %5 : vector<8x256xf32>
    %cst_10 = arith.constant dense<0.000000e+00> : vector<8xf32>
    %11 = vector.multi_reduction <add>, %10, %cst_10 [1] : vector<8x256xf32> to vector<8xf32>
    %12 = vector.shape_cast %11 : vector<8xf32> to vector<8x1xf32>
    %cst_11 = arith.constant 6.250000e-03 : f32
    %13 = vector.broadcast %cst_11 : f32 to vector<8x1xf32>
    %14 = arith.mulf %9, %13 : vector<8x1xf32>
    %cst_12 = arith.constant 6.250000e-03 : f32
    %15 = vector.broadcast %cst_12 : f32 to vector<8x1xf32>
    %16 = arith.mulf %12, %15 : vector<8x1xf32>
    %17 = arith.mulf %14, %14 : vector<8x1xf32>
    %18 = arith.subf %16, %17 : vector<8x1xf32>
    %cst_13 = arith.constant 9.99999974E-6 : f32
    %19 = vector.broadcast %cst_13 : f32 to vector<8x1xf32>
    %20 = arith.addf %18, %19 : vector<8x1xf32>
    %21 = math.rsqrt %20 : vector<8x1xf32>
    %22 = vector.broadcast %14 : vector<8x1xf32> to vector<8x256xf32>
    %23 = arith.subf %5, %22 : vector<8x256xf32>
    %24 = vector.broadcast %21 : vector<8x1xf32> to vector<8x256xf32>
    %25 = arith.mulf %23, %24 : vector<8x256xf32>
    %26 = vector.broadcast %6 : vector<1x256xf32> to vector<8x256xf32>
    %27 = arith.mulf %25, %26 : vector<8x256xf32>
    %28 = vector.broadcast %7 : vector<1x256xf32> to vector<8x256xf32>
    %29 = arith.addf %27, %28 : vector<8x256xf32>
    %cst_14 = arith.constant 0.000000e+00 : f32
    %30 = vector.broadcast %cst_14 : f32 to vector<8x256xf32>
    %31 = arith.cmpf ogt, %29, %30 : vector<8x256xf32>
    %cst_15 = arith.constant 2.000000e-01 : f32
    %32 = vector.broadcast %cst_15 : f32 to vector<8x256xf32>
    %33 = arith.mulf %32, %29 : vector<8x256xf32>
    %34 = arith.select %31, %29, %33 : vector<8x256xi1>, vector<8x256xf32>
    %35 = arith.truncf %34 : vector<8x256xf32> to vector<8x256xbf16>
    %c0_16 = arith.constant 0 : index
    %c0_17 = arith.constant 0 : index
    %36 = vector.load %arg6[%c0_16, %c0_17] : memref<256x256xbf16, #tpu.memory_space<vmem>>, vector<256x256xbf16>
    %cst_18 = arith.constant dense<0.000000e+00> : vector<8x256xf32>
    %37 = tpu.matmul %35, %36, %cst_18 {dimension_numbers = #tpu.dot_dimension_numbers<[1], [0], [0], [1], [0, 0, 1, 1], [], []>} : vector<8x256xbf16>, vector<256x256xbf16>, vector<8x256xf32> -> vector<8x256xf32>
    %c0_19 = arith.constant 0 : index
    %c0_20 = arith.constant 0 : index
    %38 = vector.load %arg7[%c0_19, %c0_20] : memref<1x256xf32, #tpu.memory_space<vmem>>, vector<1x256xf32>
    %39 = vector.broadcast %38 : vector<1x256xf32> to vector<8x256xf32>
    %40 = arith.addf %37, %39 : vector<8x256xf32>
    %c0_21 = arith.constant 0 : index
    %c0_22 = arith.constant 0 : index
    %41 = vector.load %arg8[%c0_21, %c0_22] : memref<1x256xf32, #tpu.memory_space<vmem>>, vector<1x256xf32>
    %c0_23 = arith.constant 0 : index
    %c0_24 = arith.constant 0 : index
    %42 = vector.load %arg9[%c0_23, %c0_24] : memref<1x256xf32, #tpu.memory_space<vmem>>, vector<1x256xf32>
    %cst_25 = arith.constant dense<0.000000e+00> : vector<8xf32>
    %43 = vector.multi_reduction <add>, %40, %cst_25 [1] : vector<8x256xf32> to vector<8xf32>
    %44 = vector.shape_cast %43 : vector<8xf32> to vector<8x1xf32>
    %45 = arith.mulf %40, %40 : vector<8x256xf32>
    %cst_26 = arith.constant dense<0.000000e+00> : vector<8xf32>
    %46 = vector.multi_reduction <add>, %45, %cst_26 [1] : vector<8x256xf32> to vector<8xf32>
    %47 = vector.shape_cast %46 : vector<8xf32> to vector<8x1xf32>
    %cst_27 = arith.constant 6.250000e-03 : f32
    %48 = vector.broadcast %cst_27 : f32 to vector<8x1xf32>
    %49 = arith.mulf %44, %48 : vector<8x1xf32>
    %cst_28 = arith.constant 6.250000e-03 : f32
    %50 = vector.broadcast %cst_28 : f32 to vector<8x1xf32>
    %51 = arith.mulf %47, %50 : vector<8x1xf32>
    %52 = arith.mulf %49, %49 : vector<8x1xf32>
    %53 = arith.subf %51, %52 : vector<8x1xf32>
    %cst_29 = arith.constant 9.99999974E-6 : f32
    %54 = vector.broadcast %cst_29 : f32 to vector<8x1xf32>
    %55 = arith.addf %53, %54 : vector<8x1xf32>
    %56 = math.rsqrt %55 : vector<8x1xf32>
    %57 = vector.broadcast %49 : vector<8x1xf32> to vector<8x256xf32>
    %58 = arith.subf %40, %57 : vector<8x256xf32>
    %59 = vector.broadcast %56 : vector<8x1xf32> to vector<8x256xf32>
    %60 = arith.mulf %58, %59 : vector<8x256xf32>
    %61 = vector.broadcast %41 : vector<1x256xf32> to vector<8x256xf32>
    %62 = arith.mulf %60, %61 : vector<8x256xf32>
    %63 = vector.broadcast %42 : vector<1x256xf32> to vector<8x256xf32>
    %64 = arith.addf %62, %63 : vector<8x256xf32>
    %cst_30 = arith.constant 0.000000e+00 : f32
    %65 = vector.broadcast %cst_30 : f32 to vector<8x256xf32>
    %66 = arith.cmpf ogt, %64, %65 : vector<8x256xf32>
    %cst_31 = arith.constant 2.000000e-01 : f32
    %67 = vector.broadcast %cst_31 : f32 to vector<8x256xf32>
    %68 = arith.mulf %67, %64 : vector<8x256xf32>
    %69 = arith.select %66, %64, %68 : vector<8x256xi1>, vector<8x256xf32>
    %70 = arith.truncf %69 : vector<8x256xf32> to vector<8x256xbf16>
    %c0_32 = arith.constant 0 : index
    %c0_33 = arith.constant 0 : index
    %71 = vector.load %arg10[%c0_32, %c0_33] : memref<256x256xbf16, #tpu.memory_space<vmem>>, vector<256x256xbf16>
    %cst_34 = arith.constant dense<0.000000e+00> : vector<8x256xf32>
    %72 = tpu.matmul %70, %71, %cst_34 {dimension_numbers = #tpu.dot_dimension_numbers<[1], [0], [0], [1], [0, 0, 1, 1], [], []>} : vector<8x256xbf16>, vector<256x256xbf16>, vector<8x256xf32> -> vector<8x256xf32>
    %c0_35 = arith.constant 0 : index
    %c0_36 = arith.constant 0 : index
    %73 = vector.load %arg11[%c0_35, %c0_36] : memref<1x256xf32, #tpu.memory_space<vmem>>, vector<1x256xf32>
    %74 = vector.broadcast %73 : vector<1x256xf32> to vector<8x256xf32>
    %75 = arith.addf %72, %74 : vector<8x256xf32>
    %c0_37 = arith.constant 0 : index
    %c0_38 = arith.constant 0 : index
    %76 = vector.load %arg12[%c0_37, %c0_38] : memref<8x256xf32, #tpu.memory_space<vmem>>, vector<8x256xf32>
    tpu.vector_store %arg12[%c0_37, %c0_38], %75 {strides = array<i32>} : memref<8x256xf32, #tpu.memory_space<vmem>>, vector<8x256xf32>,
    return
  }
  func.func @transform_0(%arg0: i32) -> (i32, i32) {
    %c0_i32 = arith.constant 0 : i32
    %c0_i32_0 = arith.constant 0 : i32
    return %arg0, %c0_i32 : i32, i32
  }
  func.func @transform_1(%arg0: i32) -> (i32, i32) {
    %c0_i32 = arith.constant 0 : i32
    %c0_i32_0 = arith.constant 0 : i32
    %c0_i32_1 = arith.constant 0 : i32
    return %c0_i32, %c0_i32_0 : i32, i32
  }
  func.func @transform_2(%arg0: i32) -> (i32, i32) {
    %c0_i32 = arith.constant 0 : i32
    %c0_i32_0 = arith.constant 0 : i32
    %c0_i32_1 = arith.constant 0 : i32
    return %c0_i32, %c0_i32_0 : i32, i32
  }
  func.func @transform_3(%arg0: i32) -> (i32, i32) {
    %c0_i32 = arith.constant 0 : i32
    %c0_i32_0 = arith.constant 0 : i32
    %c0_i32_1 = arith.constant 0 : i32
    return %c0_i32, %c0_i32_0 : i32, i32
  }
  func.func @transform_4(%arg0: i32) -> (i32, i32) {
    %c0_i32 = arith.constant 0 : i32
    %c0_i32_0 = arith.constant 0 : i32
    %c0_i32_1 = arith.constant 0 : i32
    return %c0_i32, %c0_i32_0 : i32, i32
  }
  func.func @transform_5(%arg0: i32) -> (i32, i32) {
    %c0_i32 = arith.constant 0 : i32
    %c0_i32_0 = arith.constant 0 : i32
    %c0_i32_1 = arith.constant 0 : i32
    return %c0_i32, %c0_i32_0 : i32, i32
  }
  func.func @transform_6(%arg0: i32) -> (i32, i32) {
    %c0_i32 = arith.constant 0 : i32
    %c0_i32_0 = arith.constant 0 : i32
    %c0_i32_1 = arith.constant 0 : i32
    return %c0_i32, %c0_i32_0 : i32, i32
  }
  func.func @transform_7(%arg0: i32) -> (i32, i32) {
    %c0_i32 = arith.constant 0 : i32
    %c0_i32_0 = arith.constant 0 : i32
    %c0_i32_1 = arith.constant 0 : i32
    return %c0_i32, %c0_i32_0 : i32, i32
  }
  func.func @transform_8(%arg0: i32) -> (i32, i32) {
    %c0_i32 = arith.constant 0 : i32
    %c0_i32_0 = arith.constant 0 : i32
    %c0_i32_1 = arith.constant 0 : i32
    return %c0_i32, %c0_i32_0 : i32, i32
  }
  func.func @transform_9(%arg0: i32) -> (i32, i32) {
    %c0_i32 = arith.constant 0 : i32
    %c0_i32_0 = arith.constant 0 : i32
    %c0_i32_1 = arith.constant 0 : i32
    return %c0_i32, %c0_i32_0 : i32, i32
  }
  func.func @transform_10(%arg0: i32) -> (i32, i32) {
    %c0_i32 = arith.constant 0 : i32
    %c0_i32_0 = arith.constant 0 : i32
    %c0_i32_1 = arith.constant 0 : i32
    return %c0_i32, %c0_i32_0 : i32, i32
  }
  func.func @transform_11(%arg0: i32) -> (i32, i32) {
    %c0_i32 = arith.constant 0 : i32
    %c0_i32_0 = arith.constant 0 : i32
    return %arg0, %c0_i32 : i32, i32
  }
}

</mosaic_0001>

<bundles_post_ra>
// kernel: tpu_custom_call.1
= control target key start
LH: loop header
LB: loop body
LE: loop exit
PB: predicated region body
PF: predicated region fallthrough
CT: control target
= control target key end

     0   :  { %16 = vsyncpa [#allocation3], 0  ;;  %s1366_s0 = inlined_call_operand.hbm [shape: bf16[8,128], index: 0, kind: input, shape index: {}]   ;;  %s1367_s1 = inlined_call_operand.hbm [shape: bf16[128,256], index: 1, kind: input, shape index: {}]   ;;  %s1368_s2 = inlined_call_operand.vmem [shape: f32[1,256], index: 2, kind: input, shape index: {}]   ;;  %s1369_s3 = inlined_call_operand.vmem [shape: f32[1,256], index: 3, kind: input, shape index: {}]   ;;  %s1370_s4 = inlined_call_operand.vmem [shape: f32[1,256], index: 4, kind: input, shape index: {}]   ;;  %s1371_s5 = inlined_call_operand.hbm [shape: bf16[256,256], index: 5, kind: input, shape index: {}]   ;;  %s1372_s6 = inlined_call_operand.vmem [shape: f32[1,256], index: 6, kind: input, shape index: {}]   ;;  %s1373_s7 = inlined_call_operand.vmem [shape: f32[1,256], index: 7, kind: input, shape index: {}]   ;;  %s1374_s8 = inlined_call_operand.vmem [shape: f32[1,256], index: 8, kind: input, shape index: {}]   ;;  %s1375_s9 = inlined_call_operand.hbm [shape: bf16[256,256], index: 9, kind: input, shape index: {}]   ;;  %s1376_s10 = inlined_call_operand.vmem [shape: f32[1,256], index: 10, kind: input, shape index: {}]   ;;  %s1377_s11 = inlined_call_operand.hbm [shape: f32[8,256], index: 11, kind: output, shape index: {}]  }
   0x1   :  { %17 = vsyncpa [#allocation6], 0 }
   0x2   :  { %18 = vsyncpa [#allocation9], 0 }
   0x3   :  { %19 = vsyncpa [#allocation4], 0  ;;  %s1190_s17 = smov [#allocation5]   ;;  %s1072_s21 = scalar_lea.hbm %s1367_s1, 2048 }
   0x4   :  { %s35_s18 = sshll.u32 %s1190_s17, 4  ;;  %p1073_p0 = scmp.ne.s32.totalorder %s1367_s1, %s1072_s21  ;;  %s36_s18 = int_to_ptr.vmem [resolvable:$true] %s35_s18 }
   0x5   :  { %p1076_p1 = scmp.lt.u32.totalorder %s1072_s21, %s1367_s1 }
   0x7   :  { %p1078_p2 = pnand %p1076_p1, %p1073_p0 }
   0x9   :  { %1081 = shalt.err (!%p1078_p2)
}
   0xa   :  { %s1082_s26 = scalar_lea.vmem %s36_s18, 2048  ;;  %p1087_p4 = scmp.lt.s32.totalorder %s36_s18, %s36_s18 }
   0xb   :  { %p1083_p3 = scmp.ne.s32.totalorder %s36_s18, %s1082_s26  ;;  %p1088_p5 = scmp.lt.s32.totalorder %s1082_s26, %s1082_s26 }
   0xd   :  { %p1089_p6 = por %p1088_p5, %p1087_p4 }
   0xf   :  { %p1090_p7 = pnand %p1089_p6, %p1083_p3 }
  0x11   :  { %1093 = shalt.err (!%p1090_p7)
}
  0x12   :  { %s1191_s27 = smov 128   ;;  %s1192_s28 = smov 8  }
  0x13   :  { %41 = dma.hbm_to_vmem [thread:$0]  %s1367_s1, 2048, %s36_s18, [#allocation6], %s1191_s27, %s1191_s27, %s1192_s28  }
  0x14   :  { %s1193_s12 = smov [#allocation2]   ;;  %s1194_s14 = smov [#allocation7]  }
  0x15   :  { %s26_s13 = sshll.u32 %s1193_s12, 4  ;;  %s53_s15 = sshll.u32 %s1194_s14, 4  ;;  %s27_s13 = int_to_ptr.vmem [resolvable:$true] %s26_s13  ;;  %s54_s15 = int_to_ptr.vmem [resolvable:$true] %s53_s15 }
  0x16   :  { %s1094_s19 = scalar_lea.hbm %s1366_s0, 64 }
  0x17   :  { %p1095_p8 = scmp.ne.s32.totalorder %s1366_s0, %s1094_s19  ;;  %p1098_p9 = scmp.lt.u32.totalorder %s1094_s19, %s1366_s0 }
  0x19   :  { %p1100_p10 = pnand %p1098_p9, %p1095_p8 }
  0x1b   :  { %1103 = shalt.err (!%p1100_p10)
}
  0x1c   :  { %s1104_s1 = scalar_lea.vmem %s27_s13, 64  ;;  %p1109_p12 = scmp.lt.s32.totalorder %s27_s13, %s27_s13 }
  0x1d   :  { %p1105_p11 = scmp.ne.s32.totalorder %s27_s13, %s1104_s1  ;;  %p1110_p13 = scmp.lt.s32.totalorder %s1104_s1, %s1104_s1 }
  0x1f   :  { %p1111_p0 = por %p1110_p13, %p1109_p12 }
  0x21   :  { %p1112_p1 = pnand %p1111_p0, %p1105_p11 }
  0x23   :  { %1115 = shalt.err (!%p1112_p1)
}
  0x24   :  { %29 = dma.hbm_to_vmem [thread:$0]  %s1366_s0, 64, %s27_s13, [#allocation3]  }
  0x25   :  { %s1116_s29 = scalar_lea.hbm %s1371_s5, 4096 }
  0x26   :  { %p1117_p2 = scmp.ne.s32.totalorder %s1371_s5, %s1116_s29  ;;  %p1120_p3 = scmp.lt.u32.totalorder %s1116_s29, %s1371_s5 }
  0x28   :  { %p1122_p4 = pnand %p1120_p3, %p1117_p2 }
  0x2a   :  { %1125 = shalt.err (!%p1122_p4)
}
  0x2b   :  { %s1126_s17 = scalar_lea.vmem %s54_s15, 4096  ;;  %p1131_p6 = scmp.lt.s32.totalorder %s54_s15, %s54_s15 }
  0x2c   :  { %p1127_p5 = scmp.ne.s32.totalorder %s54_s15, %s1126_s17  ;;  %p1132_p7 = scmp.lt.s32.totalorder %s1126_s17, %s1126_s17 }
  0x2e   :  { %p1133_p8 = por %p1132_p7, %p1131_p6 }
  0x30   :  { %p1134_p9 = pnand %p1133_p8, %p1127_p5 }
  0x32   :  { %1137 = shalt.err (!%p1134_p9)
}
  0x33   :  { %59 = dma.hbm_to_vmem [thread:$0]  %s1371_s5, 4096, %s54_s15, [#allocation6], %s1191_s27, %s1191_s27, %s1192_s28  }
  0x34   :  { %s1195_s19 = smov [#allocation8]   ;;  %s1138_s23 = scalar_lea.hbm %s1375_s9, 4096 }
  0x35   :  { %s71_s20 = sshll.u32 %s1195_s19, 4  ;;  %p1139_p10 = scmp.ne.s32.totalorder %s1375_s9, %s1138_s23  ;;  %s72_s20 = int_to_ptr.vmem [resolvable:$true] %s71_s20 }
  0x36   :  { %p1142_p11 = scmp.lt.u32.totalorder %s1138_s23, %s1375_s9 }
  0x38   :  { %p1144_p12 = pnand %p1142_p11, %p1139_p10 }
  0x3a   :  { %1147 = shalt.err (!%p1144_p12)
}
  0x3b   :  { %s1148_s26 = scalar_lea.vmem %s72_s20, 4096  ;;  %p1153_p0 = scmp.lt.s32.totalorder %s72_s20, %s72_s20 }
  0x3c   :  { %p1149_p13 = scmp.ne.s32.totalorder %s72_s20, %s1148_s26  ;;  %p1154_p1 = scmp.lt.s32.totalorder %s1148_s26, %s1148_s26 }
  0x3e   :  { %p1155_p2 = por %p1154_p1, %p1153_p0 }
  0x40   :  { %p1156_p3 = pnand %p1155_p2, %p1149_p13 }
  0x42   :  { %1159 = shalt.err (!%p1156_p3)
}
  0x43   :  { %77 = dma.hbm_to_vmem [thread:$0]  %s1375_s9, 4096, %s72_s20, [#allocation9], %s1191_s27, %s1191_s27, %s1192_s28  }
  0x44   :  { %1182 = dma.done.wait [#allocation3], 64  }
  0x45   :  { %1183 = vsyncadd [#allocation3], 4294967232 }
  0x46   :  { %1184 = dma.done.wait [#allocation6], 6144  }
  0x47   :  { %1185 = vsyncadd [#allocation6], 4294961152 }
  0x48   :  { %1186 = dma.done.wait [#allocation9], 4096  }
  0x49   :  { %1187 = vsyncadd [#allocation9], 4294963200  ;;  %v1196_v0 = vmov 0   ;;  %v948_v1 = vld [vmem:[#allocation5 + $0x4] ss:$8 sps:$4 sm:$0xff]   ;;  %v112_v34 = vlaneseq  ;;  %s1197_s17 = smov [#allocation10]  }
  0x4a   :  { %234 = vmatprep.mubr.bf16.mxu0 %v1196_v0  ;;  %v950_v2 = vld [vmem:[#allocation5] ss:$8 sps:$4 sm:$0xff]   ;;  %202 = vmatprep.subr.bf16.mxu0 %v948_v1  ;;  %v951_v3 = vld [vmem:[#allocation5 + $0x14] ss:$8 sps:$4 sm:$0xff]   ;;  %v953_v4 = vld [vmem:[#allocation5 + $0x10] ss:$8 sps:$4 sm:$0xff]  }
  0x4b   :  { %203 = vmatpush1.bf16.msra.mxu0 %v950_v2  ;;  %v954_v5 = vld [vmem:[#allocation5 + $0x24] ss:$8 sps:$4 sm:$0xff]   ;;  %v956_v6 = vld [vmem:[#allocation5 + $0x20] ss:$8 sps:$4 sm:$0xff]   ;;  %v957_v7 = vld [vmem:[#allocation5 + $0x34] ss:$8 sps:$4 sm:$0xff]  }
  0x4c   :  { %204 = vmatprep.subr.bf16.mxu0 %v951_v3  ;;  %v959_v8 = vld [vmem:[#allocation5 + $0x30] ss:$8 sps:$4 sm:$0xff]   ;;  %v960_v9 = vld [vmem:[#allocation5 + $0x44] ss:$8 sps:$4 sm:$0xff]   ;;  %v962_v10 = vld [vmem:[#allocation5 + $0x40] ss:$8 sps:$4 sm:$0xff]  }
  0x4d   :  { %v963_v11 = vld [vmem:[#allocation5 + $0x54] ss:$8 sps:$4 sm:$0xff]   ;;  %v965_v12 = vld [vmem:[#allocation5 + $0x50] ss:$8 sps:$4 sm:$0xff]   ;;  %v966_v13 = vld [vmem:[#allocation5 + $0x64] ss:$8 sps:$4 sm:$0xff]  }
  0x4e   :  { %v968_v14 = vld [vmem:[#allocation5 + $0x60] ss:$8 sps:$4 sm:$0xff]   ;;  %v969_v15 = vld [vmem:[#allocation5 + $0x74] ss:$8 sps:$4 sm:$0xff]   ;;  %v971_v16 = vld [vmem:[#allocation5 + $0x70] ss:$8 sps:$4 sm:$0xff]  }
  0x4f   :  { %205 = vmatpush1.bf16.msra.mxu0 %v953_v4  ;;  %v93_v17 = vld [vmem:[#allocation2] sm:$0xf]  ;;  %v972_v18 = vld [vmem:[#allocation7 + $0x4] ss:$8 sps:$4 sm:$0xff]   ;;  %v974_v19 = vld [vmem:[#allocation7] ss:$8 sps:$4 sm:$0xff]  }
  0x50   :  { %206 = vmatprep.subr.bf16.mxu0 %v954_v5  ;;  %v975_v20 = vld [vmem:[#allocation7 + $0x14] ss:$8 sps:$4 sm:$0xff]   ;;  %501 = vmatprep.subr.bf16.mxu1 %v972_v18  ;;  %v977_v21 = vld [vmem:[#allocation7 + $0x10] ss:$8 sps:$4 sm:$0xff]   ;;  %v978_v22 = vld [vmem:[#allocation7 + $0x24] ss:$8 sps:$4 sm:$0xff]  }
  0x51   :  { %502 = vmatpush1.bf16.msra.mxu1 %v974_v19  ;;  %v980_v23 = vld [vmem:[#allocation7 + $0x20] ss:$8 sps:$4 sm:$0xff]   ;;  %v981_v24 = vld [vmem:[#allocation7 + $0x34] ss:$8 sps:$4 sm:$0xff]   ;;  %v983_v25 = vld [vmem:[#allocation7 + $0x30] ss:$8 sps:$4 sm:$0xff]  }
  0x52   :  { %503 = vmatprep.subr.bf16.mxu1 %v975_v20  ;;  %v984_v26 = vld [vmem:[#allocation7 + $0x44] ss:$8 sps:$4 sm:$0xff]   ;;  %v986_v27 = vld [vmem:[#allocation7 + $0x40] ss:$8 sps:$4 sm:$0xff]   ;;  %v987_v28 = vld [vmem:[#allocation7 + $0x54] ss:$8 sps:$4 sm:$0xff]  }
  0x53   :  { %207 = vmatpush1.bf16.msra.mxu0 %v956_v6  ;;  %v989_v29 = vld [vmem:[#allocation7 + $0x50] ss:$8 sps:$4 sm:$0xff]   ;;  %v990_v30 = vld [vmem:[#allocation7 + $0x64] ss:$8 sps:$4 sm:$0xff]   ;;  %v992_v31 = vld [vmem:[#allocation7 + $0x60] ss:$8 sps:$4 sm:$0xff]  }
  0x54   :  { %208 = vmatprep.subr.bf16.mxu0 %v957_v7  ;;  %v993_v32 = vld [vmem:[#allocation7 + $0x74] ss:$8 sps:$4 sm:$0xff]   ;;  %v995_v33 = vld [vmem:[#allocation7 + $0x70] ss:$8 sps:$4 sm:$0xff]   ;;  %v113_v35 = vshrl.u32 %v112_v34, 7  ;;  %s849_s0 = sshll.u32 %s1197_s17, 4  ;;  %s850_s0 = int_to_ptr.vmem [resolvable:$true] %s849_s0 }
  0x55   :  { %504 = vmatpush1.bf16.msra.mxu1 %v977_v21  ;;  %v110_v37 = vld [vmem:[%s1368_s2] sm:$0x3]  ;;  %v996_v51 = vld [vmem:[#allocation7 + $0x84] ss:$8 sps:$4 sm:$0xff]   ;;  %v998_v52 = vld [vmem:[#allocation7 + $0x80] ss:$8 sps:$4 sm:$0xff]   ;;  %p1165_p5 = scmp.lt.s32.totalorder %s850_s0, %s850_s0 }
  0x56   :  { %505 = vmatprep.subr.bf16.mxu1 %v978_v22  ;;  %v1315_v36 = vsub.s32 0, %v113_v35  ;;  %v1320_v38 = vsub.s32 1, %v113_v35  ;;  %v999_v53 = vld [vmem:[#allocation7 + $0x94] ss:$8 sps:$4 sm:$0xff]   ;;  %v1001_v54 = vld [vmem:[#allocation7 + $0x90] ss:$8 sps:$4 sm:$0xff]  }
  0x57   :  { %209 = vmatpush1.bf16.msra.mxu0 %v959_v8  ;;  %v1002_v55 = vld [vmem:[#allocation7 + $0xa4] ss:$8 sps:$4 sm:$0xff]   ;;  %v1004_v56 = vld [vmem:[#allocation7 + $0xa0] ss:$8 sps:$4 sm:$0xff]   ;;  %v1005_v57 = vld [vmem:[#allocation7 + $0xb4] ss:$8 sps:$4 sm:$0xff]  }
  0x58   :  { %210 = vmatprep.subr.bf16.mxu0 %v960_v9  ;;  %v115_v39 = vrot.slane %v110_v37, %v1315_v36  ;;  %v119_v40 = vrot.slane %v110_v37, %v1320_v38  ;;  %v1007_v58 = vld [vmem:[#allocation7 + $0xb0] ss:$8 sps:$4 sm:$0xff]   ;;  %v1008_v59 = vld [vmem:[#allocation7 + $0xc4] ss:$8 sps:$4 sm:$0xff]   ;;  %v1010_v60 = vld [vmem:[#allocation7 + $0xc0] ss:$8 sps:$4 sm:$0xff]  }
  0x59   :  { %506 = vmatpush1.bf16.msra.mxu1 %v980_v23  ;;  %v1011_v61 = vld [vmem:[#allocation7 + $0xd4] ss:$8 sps:$4 sm:$0xff]   ;;  %v1013_v62 = vld [vmem:[#allocation7 + $0xd0] ss:$8 sps:$4 sm:$0xff]   ;;  %v1014_v63 = vld [vmem:[#allocation7 + $0xe4] ss:$8 sps:$4 sm:$0xff]  }
  0x5a   :  { %507 = vmatprep.subr.bf16.mxu1 %v981_v24  ;;  %v1016_v0 = vld [vmem:[#allocation7 + $0xe0] ss:$8 sps:$4 sm:$0xff]   ;;  %v1017_v1 = vld [vmem:[#allocation7 + $0xf4] ss:$8 sps:$4 sm:$0xff]   ;;  %v1019_v2 = vld [vmem:[#allocation7 + $0xf0] ss:$8 sps:$4 sm:$0xff]  }
  0x5b   :  { %211 = vmatpush1.bf16.msra.mxu0 %v962_v10  ;;  %v243_v10 = vld [vmem:[%s1369_s3] sm:$0x3]  ;;  %v1023_v34 = vld [vmem:[#allocation8 + $0x10] ss:$8 sps:$4 sm:$0xff]   ;;  %v1028_v35 = vld [vmem:[#allocation8 + $0x24] ss:$8 sps:$4 sm:$0xff]  }
  0x5c   :  { %212 = vmatprep.subr.bf16.mxu0 %v963_v11  ;;  %v244_v11 = vld [vmem:[%s1370_s4] sm:$0x3]  ;;  %v1026_v37 = vld [vmem:[#allocation8 + $0x20] ss:$8 sps:$4 sm:$0xff]   ;;  %s1160_s13 = scalar_lea.vmem %s850_s0, 256 }
  0x5d   :  { %508 = vmatpush1.bf16.msra.mxu1 %v983_v25  ;;  %v280_v18 = vrot.slane %v244_v11, %v1315_v36  ;;  %v284_v19 = vrot.slane %v244_v11, %v1320_v38  ;;  %v1062_v11 = vld [vmem:[#allocation8 + $0xe0] ss:$8 sps:$4 sm:$0xff]   ;;  %p1161_p4 = scmp.ne.s32.totalorder %s850_s0, %s1160_s13  ;;  %p1166_p6 = scmp.lt.s32.totalorder %s1160_s13, %s1160_s13 }
  0x5e   :  { %509 = vmatprep.subr.bf16.mxu1 %v984_v26 }
  0x5f   :  { %213 = vmatpush1.bf16.msra.mxu0 %v965_v12  ;;  %p1167_p7 = por %p1166_p6, %p1165_p5 }
  0x60   :  { %214 = vmatprep.subr.bf16.mxu0 %v966_v13 }
  0x61   :  { %510 = vmatpush1.bf16.msra.mxu1 %v986_v27  ;;  %p1168_p8 = pnand %p1167_p7, %p1161_p4 }
  0x62   :  { %511 = vmatprep.subr.bf16.mxu1 %v987_v28 }
  0x63   :  { %215 = vmatpush1.bf16.msra.mxu0 %v968_v14  ;;  %v267_v14 = vrot.slane %v243_v10, %v1315_v36 }
  0x64   :  { %216 = vmatprep.subr.bf16.mxu0 %v969_v15  ;;  %v271_v15 = vrot.slane %v243_v10, %v1320_v38  ;;  %v1064_v10 = vld [vmem:[#allocation8 + $0xe4] ss:$8 sps:$4 sm:$0xff]  }
  0x65   :  { %512 = vmatpush1.bf16.msra.mxu1 %v989_v29 }
  0x66   :  { %513 = vmatprep.subr.bf16.mxu1 %v990_v30 }
  0x67   :  { %217 = vmatpush1.bf16.msra.mxu0 %v971_v16 }
  0x69   :  { %514 = vmatpush1.bf16.msra.mxu1 %v992_v31  ;;  %v1020_v31 = vld [vmem:[#allocation8] ss:$8 sps:$4 sm:$0xff]  }
  0x6a   :  { %235 = vmatmul.mubr.bf16.vlgmr.msra.gmra.mrb[0].mxu0 %v93_v17  ;;  %515 = vmatprep.subr.bf16.mxu1 %v993_v32  ;;  %v1022_v32 = vld [vmem:[#allocation8 + $0x4] ss:$8 sps:$4 sm:$0xff]  }
  0x6b   :  { %800 = vmatprep.subr.bf16.mxu0 %v1022_v32 }
  0x6c   :  { %801 = vmatpush1.bf16.msra.mxu0 %v1020_v31 }
  0x6d   :  { %516 = vmatpush1.bf16.msra.mxu1 %v995_v33  ;;  %v1025_v33 = vld [vmem:[#allocation8 + $0x14] ss:$8 sps:$4 sm:$0xff]  }
  0x6e   :  { %517 = vmatprep.subr.bf16.mxu1 %v996_v51  ;;  %802 = vmatprep.subr.bf16.mxu0 %v1025_v33 }
  0x70   :  { %803 = vmatpush1.bf16.msra.mxu0 %v1023_v34 }
  0x71   :  { %518 = vmatpush1.bf16.msra.mxu1 %v998_v52  ;;  %804 = vmatprep.subr.bf16.mxu0 %v1028_v35 }
  0x72   :  { %519 = vmatprep.subr.bf16.mxu1 %v999_v53 }
  0x74   :  { %805 = vmatpush1.bf16.msra.mxu0 %v1026_v37 }
  0x75   :  { %520 = vmatpush1.bf16.msra.mxu1 %v1001_v54 }
  0x76   :  { %521 = vmatprep.subr.bf16.mxu1 %v1002_v55 }
  0x79   :  { %522 = vmatpush1.bf16.msra.mxu1 %v1004_v56 }
  0x7a   :  { %523 = vmatprep.subr.bf16.mxu1 %v1005_v57 }
  0x7d   :  { %524 = vmatpush1.bf16.msra.mxu1 %v1007_v58 }
  0x7e   :  { %525 = vmatprep.subr.bf16.mxu1 %v1008_v59 }
  0x81   :  { %526 = vmatpush1.bf16.msra.mxu1 %v1010_v60 }
  0x82   :  { %527 = vmatprep.subr.bf16.mxu1 %v1011_v61 }
  0x85   :  { %528 = vmatpush1.bf16.msra.mxu1 %v1013_v62  ;;  %v1046_v62 = vld [vmem:[#allocation8 + $0x84] ss:$8 sps:$4 sm:$0xff]  }
  0x86   :  { %529 = vmatprep.subr.bf16.mxu1 %v1014_v63  ;;  %v1044_v63 = vld [vmem:[#allocation8 + $0x80] ss:$8 sps:$4 sm:$0xff]  }
  0x89   :  { %530 = vmatpush1.bf16.msra.mxu1 %v1016_v0  ;;  %v1049_v0 = vld [vmem:[#allocation8 + $0x94] ss:$8 sps:$4 sm:$0xff]  }
  0x8a   :  { %531 = vmatprep.subr.bf16.mxu1 %v1017_v1  ;;  %v1047_v1 = vld [vmem:[#allocation8 + $0x90] ss:$8 sps:$4 sm:$0xff]  }
  0x8d   :  { %532 = vmatpush1.bf16.msra.mxu1 %v1019_v2  ;;  %v1052_v2 = vld [vmem:[#allocation8 + $0xa4] ss:$8 sps:$4 sm:$0xff]  }
 0x13d   :  { %v236_v41 = vpop.f32.mrb[0].mxu0 }
 0x13e   :  { %v237_v42 = vadd.f32 %v236_v41, %v115_v39  ;;  %v238_v43 = vpop.f32.mrb[1].mxu0  ;;  %v1031_v39 = vld [vmem:[#allocation8 + $0x34] ss:$8 sps:$4 sm:$0xff]   ;;  %v1034_v41 = vld [vmem:[#allocation8 + $0x44] ss:$8 sps:$4 sm:$0xff]  }
 0x13f   :  { %v239_v44 = vadd.f32 %v238_v43, %v119_v40  ;;  %v240_v45 = vpop.f32.mrb[2].mxu0  ;;  %v1029_v40 = vld [vmem:[#allocation8 + $0x30] ss:$8 sps:$4 sm:$0xff]   ;;  %806 = vmatprep.subr.bf16.mxu0 %v1031_v39  ;;  %v1037_v43 = vld [vmem:[#allocation8 + $0x54] ss:$8 sps:$4 sm:$0xff]  }
 0x140   :  { %v241_v46 = vpop.f32.mrb[3].mxu0  ;;  %v248_v48 = vmul.f32 %v237_v42, %v237_v42  ;;  %807 = vmatpush1.bf16.msra.mxu0 %v1029_v40  ;;  %v1040_v45 = vld [vmem:[#allocation8 + $0x64] ss:$8 sps:$4 sm:$0xff]  }
 0x141   :  { %v245_v47 = vadd.f32 %v239_v44, %v237_v42  ;;  %v249_v49 = vmul.f32 %v239_v44, %v239_v44  ;;  %808 = vmatprep.subr.bf16.mxu0 %v1034_v41  ;;  %v1038_v46 = vld [vmem:[#allocation8 + $0x60] ss:$8 sps:$4 sm:$0xff]  }
 0x143   :  { %246 = vadd.xlane.f32.xlu0 %v245_v47  ;;  %v250_v50 = vadd.f32 %v249_v49, %v248_v48  ;;  %v1043_v47 = vld [vmem:[#allocation8 + $0x74] ss:$8 sps:$4 sm:$0xff]   ;;  %v1041_v48 = vld [vmem:[#allocation8 + $0x70] ss:$8 sps:$4 sm:$0xff]  }
 0x144   :  { %v329_v49 = vld [vmem:[%s1372_s6] sm:$0x3] }
 0x145   :  { %v338_v51 = vrot.slane %v329_v49, %v1320_v38 }
 0x147   :  { %251 = vadd.xlane.f32.xlu0 %v250_v50  ;;  %v334_v50 = vrot.slane %v329_v49, %v1315_v36 }
 0x1d0   :  { %v247_v3 = vpop.xlane.xlu0 %246 }
 0x1d1   :  { %v253_v4 = vmul.f32 0.00625, %v247_v3  ;;  %v1050_v3 = vld [vmem:[#allocation8 + $0xa0] ss:$8 sps:$4 sm:$0xff]  }
 0x1d3   :  { %v255_v6 = vmul.f32 %v253_v4, %v253_v4  ;;  %v259_v12 = vsub.f32 %v237_v42, %v253_v4  ;;  %v260_v13 = vsub.f32 %v239_v44, %v253_v4  ;;  %v1032_v42 = vld [vmem:[#allocation8 + $0x40] ss:$8 sps:$4 sm:$0xff]   ;;  %v1035_v44 = vld [vmem:[#allocation8 + $0x50] ss:$8 sps:$4 sm:$0xff]   ;;  %v1055_v4 = vld [vmem:[#allocation8 + $0xb4] ss:$8 sps:$4 sm:$0xff]  }
 0x1d4   :  { %v252_v5 = vpop.xlane.xlu0 %251  ;;  %809 = vmatpush1.bf16.msra.mxu0 %v1032_v42 }
 0x1d5   :  { %v254_v7 = vmul.f32 0.00625, %v252_v5  ;;  %810 = vmatprep.subr.bf16.mxu0 %v1037_v43  ;;  %v1053_v5 = vld [vmem:[#allocation8 + $0xb0] ss:$8 sps:$4 sm:$0xff]  }
 0x1d7   :  { %v256_v8 = vsub.f32 %v254_v7, %v255_v6  ;;  %v1058_v6 = vld [vmem:[#allocation8 + $0xc4] ss:$8 sps:$4 sm:$0xff]   ;;  %v1056_v7 = vld [vmem:[#allocation8 + $0xc0] ss:$8 sps:$4 sm:$0xff]  }
 0x1d8   :  { %811 = vmatpush1.bf16.msra.mxu0 %v1035_v44  ;;  %v628_v44 = vld [vmem:[%s1376_s10] sm:$0x3] }
 0x1d9   :  { %v257_v9 = vadd.f32 1e-05, %v256_v8  ;;  %812 = vmatprep.subr.bf16.mxu0 %v1040_v45  ;;  %v1061_v8 = vld [vmem:[#allocation8 + $0xd4] ss:$8 sps:$4 sm:$0xff]   ;;  %v633_v45 = vrot.slane %v628_v44, %v1315_v36 }
 0x1db   :  { %1068 = vrsqrt.f32 %v257_v9  ;;  %v1059_v9 = vld [vmem:[#allocation8 + $0xd0] ss:$8 sps:$4 sm:$0xff]  }
 0x1dc   :  { %813 = vmatpush1.bf16.msra.mxu0 %v1038_v46  ;;  %v637_v46 = vrot.slane %v628_v44, %v1320_v38 }
 0x1dd   :  { %814 = vmatprep.subr.bf16.mxu0 %v1043_v47 }
 0x1e0   :  { %815 = vmatpush1.bf16.msra.mxu0 %v1041_v48 }
 0x1e1   :  { %816 = vmatprep.subr.bf16.mxu0 %v1046_v62 }
 0x1e4   :  { %817 = vmatpush1.bf16.msra.mxu0 %v1044_v63 }
 0x1e5   :  { %v1069_v16 = vpop.eup %1068  ;;  %818 = vmatprep.subr.bf16.mxu0 %v1049_v0 }
 0x1e6   :  { %v262_v17 = vmul.f32 %v1069_v16, %v260_v13  ;;  %v261_v20 = vmul.f32 %v1069_v16, %v259_v12  ;;  %v1067_v12 = vld [vmem:[#allocation8 + $0xf4] ss:$8 sps:$4 sm:$0xff]   ;;  %v1065_v13 = vld [vmem:[#allocation8 + $0xf0] ss:$8 sps:$4 sm:$0xff]  }
 0x1e8   :  { %v275_v21 = vmul.f32 %v271_v15, %v262_v17  ;;  %v274_v22 = vmul.f32 %v267_v14, %v261_v20  ;;  %819 = vmatpush1.bf16.msra.mxu0 %v1047_v1 }
 0x1e9   :  { %820 = vmatprep.subr.bf16.mxu0 %v1052_v2 }
 0x1ea   :  { %v288_v23 = vadd.f32 %v284_v19, %v275_v21  ;;  %v287_v24 = vadd.f32 %v280_v18, %v274_v22  ;;  %v542_v21 = vld [vmem:[%s1373_s7] sm:$0x3] }
 0x1eb   :  { %v543_v22 = vld [vmem:[%s1374_s8] sm:$0x3] }
 0x1ec   :  { %vm290_vm0 = vcmp.gt.f32.partialorder %v288_v23, 0.0  ;;  %v292_v25 = vmul.f32 0.2, %v288_v23  ;;  %vm289_vm1 = vcmp.gt.f32.partialorder %v287_v24, 0.0  ;;  %v291_v26 = vmul.f32 0.2, %v287_v24  ;;  %821 = vmatpush1.bf16.msra.mxu0 %v1050_v3 }
 0x1ed   :  { %822 = vmatprep.subr.bf16.mxu0 %v1055_v4  ;;  %v583_v31 = vrot.slane %v543_v22, %v1320_v38 }
 0x1ee   :  { %v294_v27 = vsel %vm290_vm0, %v288_v23, %v292_v25  ;;  %v293_v28 = vsel %vm289_vm1, %v287_v24, %v291_v26  ;;  %v566_v25 = vrot.slane %v542_v21, %v1315_v36  ;;  %v570_v26 = vrot.slane %v542_v21, %v1320_v38 }
 0x1ef   :  { %v296_v29 = vpack.c.bf16 %v294_v27, %v294_v27  ;;  %v295_v30 = vpack.c.bf16 %v293_v28, %v293_v28 }
 0x1f0   :  { %823 = vmatpush1.bf16.msra.mxu0 %v1053_v5 }
 0x1f1   :  { %533 = vmatprep.mubr.bf16.mxu1 %v296_v29  ;;  %824 = vmatprep.subr.bf16.mxu0 %v1058_v6 }
 0x1f2   :  { %534 = vmatmul.mubr.bf16.vlgmr.msra.gmra.mrb[0].mxu1 %v295_v30  ;;  %v579_v30 = vrot.slane %v543_v22, %v1315_v36 }
 0x1f4   :  { %825 = vmatpush1.bf16.msra.mxu0 %v1056_v7 }
 0x1f5   :  { %826 = vmatprep.subr.bf16.mxu0 %v1061_v8 }
 0x1f8   :  { %827 = vmatpush1.bf16.msra.mxu0 %v1059_v9 }
 0x1f9   :  { %828 = vmatprep.subr.bf16.mxu0 %v1064_v10 }
 0x1fc   :  { %829 = vmatpush1.bf16.msra.mxu0 %v1062_v11 }
 0x1fd   :  { %830 = vmatprep.subr.bf16.mxu0 %v1067_v12 }
 0x200   :  { %831 = vmatpush1.bf16.msra.mxu0 %v1065_v13 }
 0x2c5   :  { %v535_v52 = vpop.f32.mrb[0].mxu1 }
 0x2c6   :  { %v536_v53 = vadd.f32 %v535_v52, %v334_v50  ;;  %v537_v54 = vpop.f32.mrb[1].mxu1 }
 0x2c7   :  { %v538_v55 = vadd.f32 %v537_v54, %v338_v51  ;;  %v539_v56 = vpop.f32.mrb[2].mxu1 }
 0x2c8   :  { %v540_v57 = vpop.f32.mrb[3].mxu1  ;;  %v547_v59 = vmul.f32 %v536_v53, %v536_v53 }
 0x2c9   :  { %v544_v58 = vadd.f32 %v538_v55, %v536_v53  ;;  %v548_v60 = vmul.f32 %v538_v55, %v538_v55 }
 0x2cb   :  { %545 = vadd.xlane.f32.xlu1 %v544_v58  ;;  %v549_v61 = vadd.f32 %v548_v60, %v547_v59 }
 0x2cf   :  { %550 = vadd.xlane.f32.xlu1 %v549_v61 }
 0x358   :  { %v546_v14 = vpop.xlane.xlu1 %545 }
 0x359   :  { %v552_v15 = vmul.f32 0.00625, %v546_v14 }
 0x35b   :  { %v554_v17 = vmul.f32 %v552_v15, %v552_v15  ;;  %v558_v23 = vsub.f32 %v536_v53, %v552_v15  ;;  %v559_v24 = vsub.f32 %v538_v55, %v552_v15 }
 0x35c   :  { %v551_v16 = vpop.xlane.xlu1 %550 }
 0x35d   :  { %v553_v18 = vmul.f32 0.00625, %v551_v16 }
 0x35f   :  { %v555_v19 = vsub.f32 %v553_v18, %v554_v17 }
 0x361   :  { %v556_v20 = vadd.f32 1e-05, %v555_v19 }
 0x363   :  { %1070 = vrsqrt.f32 %v556_v20 }
 0x36d   :  { %v1071_v27 = vpop.eup %1070 }
 0x36e   :  { %v560_v28 = vmul.f32 %v1071_v27, %v558_v23  ;;  %v561_v29 = vmul.f32 %v1071_v27, %v559_v24 }
 0x370   :  { %v574_v32 = vmul.f32 %v570_v26, %v561_v29  ;;  %v573_v33 = vmul.f32 %v566_v25, %v560_v28 }
 0x372   :  { %v587_v34 = vadd.f32 %v583_v31, %v574_v32  ;;  %v586_v35 = vadd.f32 %v579_v30, %v573_v33 }
 0x374   :  { %vm589_vm2 = vcmp.gt.f32.partialorder %v587_v34, 0.0  ;;  %v591_v37 = vmul.f32 0.2, %v587_v34  ;;  %vm588_vm3 = vcmp.gt.f32.partialorder %v586_v35, 0.0  ;;  %v590_v39 = vmul.f32 0.2, %v586_v35 }
 0x376   :  { %v593_v40 = vsel %vm589_vm2, %v587_v34, %v591_v37  ;;  %v592_v41 = vsel %vm588_vm3, %v586_v35, %v590_v39 }
 0x377   :  { %v595_v42 = vpack.c.bf16 %v593_v40, %v593_v40  ;;  %v594_v43 = vpack.c.bf16 %v592_v41, %v592_v41 }
 0x379   :  { %832 = vmatprep.mubr.bf16.mxu0 %v595_v42 }
 0x37a   :  { %833 = vmatmul.mubr.bf16.vlgmr.msra.gmra.mrb[4].mxu0 %v594_v43 }
 0x44d   :  { %v834_v47 = vpop.f32.mrb[4].mxu0 }
 0x44e   :  { %v835_v48 = vadd.f32 %v834_v47, %v633_v45  ;;  %v836_v49 = vpop.f32.mrb[5].mxu0 }
 0x44f   :  { %v837_v50 = vadd.f32 %v836_v49, %v637_v46  ;;  %v838_v51 = vpop.f32.mrb[6].mxu0 }
 0x450   :  { %841 = vst [vmem:[#allocation10] sm:$0xff] %v835_v48  ;;  %v839_v52 = vpop.f32.mrb[7].mxu0 }
 0x451   :  { %842 = vst [vmem:[#allocation10 + $0x8] sm:$0xff] %v837_v50 }
 0x452   :  { %1171 = shalt.err (!%p1168_p8)
}
 0x453   :  { %s1172_s20 = scalar_lea.hbm %s1377_s11, 256 }
 0x454   :  { %p1173_p9 = scmp.ne.s32.totalorder %s1377_s11, %s1172_s20  ;;  %p1176_p10 = scmp.lt.u32.totalorder %s1172_s20, %s1377_s11 }
 0x456   :  { %p1178_p11 = pnand %p1176_p10, %p1173_p9 }
 0x458   :  { %1181 = shalt.err (!%p1178_p11)
}
 0x459   :  { %852 = dma.vmem_to_hbm [thread:$0]  %s850_s0, 256, %s1377_s11, [#allocation4]  }
 0x45a   :  { %1188 = dma.done.wait [#allocation4], 256  }
 0x45b   :  { %1189 = vsyncadd [#allocation4], 4294967040 }
 0x45c   :  { %856 = vsyncpa [#allocation3], 1 }
 0x45d   :  { %857 = vsyncpa [#allocation6], 1 }
 0x45e   :  { %858 = vsyncpa [#allocation9], 1 }
 0x45f   :  { %859 = vsyncpa [#allocation4], 1 }

</bundles_post_ra>
